<compile_context>
chip_gen: v6e
topology: v6e:2x2x1
jax: 0.10.0
libtpu: 0.0.40
codegen_flags: <defaults>
</compile_context>

<pallas_src>
import numpy as np
import jax
import jax.numpy as jnp
from jax.experimental import pallas as pl
from jax.experimental.pallas import tpu as pltpu

MAX_LABEL = 10  # labels > 10 are "empty" (exact reference semantics)


# ------------------------------------------------------------------------ kernel
def _compact_kernel(gt_ref, src_ref, out_ref):
    """Compact a (bt, 8, N) slab into stable kept-row order along the lane axis.

    gt_ref  : (bt, 8, N) f32  -- gt boxes, feature-major (row 7 = label), N lane-dense
    src_ref : (bt, 1, N) i32  -- src_of[d] = source row landing in destination column d
    out_ref : (bt, 8, N) f32  -- lane-dense compacted slab (columns >= count are don't-care)
    """
    bt = gt_ref.shape[0]
    n = gt_ref.shape[2]
    # Source-row ids along the sublane axis (hoisted: built once per grid step).
    src_iota = jax.lax.broadcasted_iota(jnp.int32, (n, n), 0)

    def body(i, carry):
        # gather[src, dst] = 1 iff source row `src` lands in destination column `dst`.
        # Exactly one per-lane compare + one cast; no cross-lane traffic.
        gather = (src_iota == src_ref[i]).astype(jnp.float32)          # (N_src, N_dst)
        # One MXU matmul: (8, N_src) @ (N_src, N_dst) -> (8, N_dst), lane-dense store.
        # HIGHEST precision => exact f32 pass-through of coords and labels.
        out_ref[i] = jnp.dot(gt_ref[i], gather,
                             preferred_element_type=jnp.float32,
                             precision=jax.lax.Precision.HIGHEST)
        return carry

    jax.lax.fori_loop(0, bt, body, 0, unroll=min(2, bt))


# --------------------------------------------------------------------- tiling helpers
def _vmem_limit_bytes():
    """Generation-aware VMEM reservation (<= 32 MiB, <= half of physical VMEM)."""
    try:
        cap = pltpu.get_tpu_info().vmem_capacity_bytes
    except Exception:
        cap = 64 * 1024 * 1024
    return int(min(32 * 1024 * 1024, cap // 2))


def _pick_batch_tile(batch, n_pad, vmem_limit):
    """Largest divisor of `batch` that fits the VMEM budget with >= min(batch,4) grid steps."""
    # Auto-pipelined (double-buffered) per-row blocks: gt (8,n) f32 + src (1,n) i32 + out (8,n) f32.
    per_row = 2 * (8 * n_pad * 4 + n_pad * 4 + 8 * n_pad * 4)
    # With the fori_loop (unroll=2) only ~2 (n,n) f32 gather matrices + one product are live.
    live = 2 * 4 * n_pad * n_pad + 4 * 8 * n_pad + (64 << 10)
    budget = int(0.6 * vmem_limit)            # consistent with vmem_limit_bytes reservation
    bt = max(1, min(batch, (budget - live) // per_row))
    # Keep the 1-D grid at >= min(batch, 4) steps: "parallel" only buys the 2-TC split on
    # v7x if there are >= 2 steps, and the input/output pipeline needs work to overlap.
    bt = min(bt, max(1, batch // min(batch, 4)))
    while batch % bt:
        bt -= 1
    return bt


def _compact_pallas(gt_t, src_of):
    """gt_t: (B, 8, Np) f32, src_of: (B, 1, Np) i32 -> (B, 8, Np) compacted slab."""
    B, C, Np = gt_t.shape
    assert C == 8 and Np % 128 == 0
    vmem_limit = _vmem_limit_bytes()
    bt = _pick_batch_tile(B, Np, vmem_limit)

    grid_spec = pltpu.PrefetchScalarGridSpec(
        num_scalar_prefetch=0,
        grid=(B // bt,),
        in_specs=[
            pl.BlockSpec((bt, 8, Np), lambda b: (b, 0, 0)),
            pl.BlockSpec((bt, 1, Np), lambda b: (b, 0, 0)),
        ],
        out_specs=pl.BlockSpec((bt, 8, Np), lambda b: (b, 0, 0)),
    )
    return pl.pallas_call(
        _compact_kernel,
        out_shape=jax.ShapeDtypeStruct((B, 8, Np), jnp.float32),
        grid_spec=grid_spec,
        compiler_params=pltpu.CompilerParams(
            # Batch blocks are independent -> shard across both TCs on v7x.
            dimension_semantics=("parallel",),
            # Same number the tile budget was derived from (no over-reservation).
            vmem_limit_bytes=vmem_limit,
            # Let XLA fuse the transpose / pad producers into the Pallas input pipeline
            # instead of launching a standalone relayout kernel.
            allow_input_fusion=[True, True],
        ),
    )(gt_t, src_of)


# --------------------------------------------------------------------- device forward
@jax.jit
def _gt_proposals_device(gt_boxes):
    """(B, N, 8) -> ((B, 8, Np) lane-dense compacted slab, (B,) valid counts)."""
    gt_boxes = gt_boxes.astype(jnp.float32)
    B, N, _ = gt_boxes.shape
    labels = gt_boxes[..., 7]
    # Reference: is_empty = labels.long() > 10  (truncation toward zero).
    valid = jnp.trunc(labels) <= float(MAX_LABEL)                      # (B, N)
    counts = jnp.sum(valid, axis=-1).astype(jnp.int32)                 # (B,)

    # Pad N up to a lane-dense multiple of 128; padded rows are marked invalid.
    n_pad = ((N + 127) // 128) * 128
    gt_pad = jnp.pad(gt_boxes, ((0, 0), (0, n_pad - N), (0, 0)))
    valid_pad = jnp.pad(valid, ((0, 0), (0, n_pad - N)), constant_values=False)

    # Inverse permutation: src_of[d] = source row landing in compacted column d
    # (stable argsort -> kept rows first, in original order). O(B*N) side input only.
    src_of = jnp.argsort(~valid_pad, axis=-1, stable=True).astype(jnp.int32)   # (B, Np)

    # Lane-dense working layout (feature-major, N on the 128-lane axis).
    gt_t = jnp.transpose(gt_pad, (0, 2, 1))                            # (B, 8, Np)
    compacted_t = _compact_pallas(gt_t, src_of[:, None, :])            # (B, 8, Np)
    return compacted_t, counts


# ------------------------------------------------------------------------ host glue
def gt_proposals_forward(batch_dict):
    """JAX/Pallas equivalent of GTProposals.forward (inference only)."""
    gt_boxes = batch_dict["gt_boxes"]
    batch_size = int(batch_dict["batch_size"])

    # Single packed device->host transfer (implicitly blocks).
    compacted_t, counts = jax.device_get(_gt_proposals_device(gt_boxes))

    # TODO(synk): variable-length per-sample outputs (boolean-mask indexing) have no
    # TPU-side representation; the padded lane-dense slab + counts are sliced here.
    final_box_dicts = []
    for k in range(batch_size):
        n_valid = int(counts[k])
        slab = compacted_t[k]                                          # (8, Np) numpy
        final_box_dicts.append(dict(
            pred_boxes=np.ascontiguousarray(slab[:7, :n_valid].T),     # (n_valid, 7)
            pred_scores=np.ones((n_valid,), np.float32),               # constant 1, host-side
            pred_labels=slab[7, :n_valid].astype(np.int64),            # trunc toward zero, like .long()
        ))
    batch_dict["final_box_dicts"] = final_box_dicts
    return batch_dict


def _numpy_reference(gt_boxes):
    """Mirror of the PyTorch get_bboxes for verification."""
    ret = []
    g = np.asarray(gt_boxes)
    for k in range(g.shape[0]):
        b = g[k]
        labels = b[..., -1].astype(np.int64)
        boxes = b[..., :7]
        keep = ~(labels > MAX_LABEL)
        ret.append(dict(
            pred_boxes=boxes[keep],
            pred_scores=np.ones(int(keep.sum()), np.float32),
            pred_labels=labels[keep],
        ))
    return ret


if __name__ == "__main__":
    key = jax.random.PRNGKey(0)
    B, N = 2, 16

    k_box, k_lab, k_empty = jax.random.split(key, 3)
    boxes = jax.random.normal(k_box, (B, N, 7), dtype=jnp.float32) * 5.0
    labels = jax.random.randint(k_lab, (B, N), 1, 4).astype(jnp.float32)
    # Mark a deterministic subset of boxes as "empty" (label > 10).
    empty_mask = jax.random.bernoulli(k_empty, 0.3, (B, N))
    labels = jnp.where(empty_mask, 11.0, labels)
    gt_boxes = jnp.concatenate([boxes, labels[..., None]], axis=-1)    # (B, N, 8)

    # Run the kernel once and block on the device result.
    dev_out = _gt_proposals_device(gt_boxes)
    jax.block_until_ready(dev_out)

    batch_dict = {"batch_size": B, "gt_boxes": gt_boxes}
    out = gt_proposals_forward(batch_dict)

    ref = _numpy_reference(gt_boxes)
    for k in range(B):
        got = out["final_box_dicts"][k]
        np.testing.assert_allclose(got["pred_boxes"], ref[k]["pred_boxes"],
                                   rtol=1e-6, atol=1e-6)
        np.testing.assert_allclose(got["pred_scores"], ref[k]["pred_scores"])
        np.testing.assert_array_equal(got["pred_labels"], ref[k]["pred_labels"])

    print("KERNEL_OK")
</pallas_src>

<mosaic_0001>
module attributes {stable_mosaic.version = 11 : i64} {
  func.func @_compact_kernel(%arg0: i32, %arg1: memref<1x8x128xf32, #tpu.memory_space<vmem>>, %arg2: memref<1x1x128xi32, #tpu.memory_space<vmem>>, %arg3: memref<1x8x128xf32, #tpu.memory_space<vmem>>) attributes {dimension_semantics = [#tpu.dimension_semantics<parallel>], iteration_bounds = array<i64: 2>, scalar_prefetch = 0 : i64, scratch_operands = 0 : i64, tpu.core_type = #tpu.core_type<tc>, window_params = [{transform_indices = @transform_0, window_bounds = array<i64: 1, 8, 128>}, {transform_indices = @transform_1, window_bounds = array<i64: 1, 1, 128>}, {transform_indices = @transform_2, window_bounds = array<i64: 1, 8, 128>}]} {
    %0 = tpu.iota {dimensions = array<i32: 0>} : vector<128x128xi32>
    %c0_i32 = arith.constant 0 : i32
    %1 = arith.index_cast %c0_i32 : i32 to index
    %c0 = arith.constant 0 : index
    %c0_0 = arith.constant 0 : index
    %2 = vector.load %arg2[%1, %c0, %c0_0] : memref<1x1x128xi32, #tpu.memory_space<vmem>>, vector<1x1x128xi32>
    %3 = vector.shape_cast %2 : vector<1x1x128xi32> to vector<1x128xi32>
    %4 = vector.broadcast %3 : vector<1x128xi32> to vector<128x128xi32>
    %5 = arith.cmpi eq, %0, %4 : vector<128x128xi32>
    %6 = arith.extui %5 : vector<128x128xi1> to vector<128x128xi32>
    %7 = arith.sitofp %6 : vector<128x128xi32> to vector<128x128xf32>
    %8 = arith.index_cast %c0_i32 : i32 to index
    %c0_1 = arith.constant 0 : index
    %c0_2 = arith.constant 0 : index
    %9 = vector.load %arg1[%8, %c0_1, %c0_2] : memref<1x8x128xf32, #tpu.memory_space<vmem>>, vector<1x8x128xf32>
    %10 = vector.shape_cast %9 : vector<1x8x128xf32> to vector<8x128xf32>
    %cst = arith.constant dense<0.000000e+00> : vector<8x128xf32>
    %11 = tpu.matmul %10, %7, %cst {dimension_numbers = #tpu.dot_dimension_numbers<[1], [0], [0], [1], [0, 0, 1, 1], [], []>, precision = #tpu.contract_precision<fp32>} : vector<8x128xf32>, vector<128x128xf32>, vector<8x128xf32> -> vector<8x128xf32>
    %12 = arith.index_cast %c0_i32 : i32 to index
    %c0_3 = arith.constant 0 : index
    %c0_4 = arith.constant 0 : index
    %13 = vector.load %arg3[%12, %c0_3, %c0_4] : memref<1x8x128xf32, #tpu.memory_space<vmem>>, vector<1x8x128xf32>
    %14 = vector.shape_cast %13 : vector<1x8x128xf32> to vector<8x128xf32>
    %15 = vector.shape_cast %11 : vector<8x128xf32> to vector<1x8x128xf32>
    tpu.vector_store %arg3[%12, %c0_3, %c0_4], %15 {strides = array<i32>} : memref<1x8x128xf32, #tpu.memory_space<vmem>>, vector<1x8x128xf32>,
    %c1_i32 = arith.constant 1 : i32
    return
  }
  func.func @transform_0(%arg0: i32) -> (i32, i32, i32) {
    %c0_i32 = arith.constant 0 : i32
    %c0_i32_0 = arith.constant 0 : i32
    %c0_i32_1 = arith.constant 0 : i32
    return %arg0, %c0_i32, %c0_i32_0 : i32, i32, i32
  }
  func.func @transform_1(%arg0: i32) -> (i32, i32, i32) {
    %c0_i32 = arith.constant 0 : i32
    %c0_i32_0 = arith.constant 0 : i32
    %c0_i32_1 = arith.constant 0 : i32
    return %arg0, %c0_i32, %c0_i32_0 : i32, i32, i32
  }
  func.func @transform_2(%arg0: i32) -> (i32, i32, i32) {
    %c0_i32 = arith.constant 0 : i32
    %c0_i32_0 = arith.constant 0 : i32
    %c0_i32_1 = arith.constant 0 : i32
    return %arg0, %c0_i32, %c0_i32_0 : i32, i32, i32
  }
}

</mosaic_0001>

<bundles_post_ra>
// kernel: _gt_proposals_device.2
= control target key start
LH: loop header
LB: loop body
LE: loop exit
PB: predicated region body
PF: predicated region fallthrough
CT: control target
= control target key end

     0   :  { %9 = vsyncpa [#allocation8], 0  ;;  %s2187_s0 = inlined_call_operand.vmem [shape: s32[2,1,128], index: 0, kind: input, shape index: {}]   ;;  %s2188_s1 = inlined_call_operand.vmem [shape: f32[2,16,8], index: 1, kind: input, shape index: {}]   ;;  %s2189_s2 = inlined_call_operand.<no memory space> [shape: f32[], index: 2, kind: input, shape index: {}]   ;;  %s2190_s3 = inlined_call_operand.hbm [shape: f32[2,8,128], index: 3, kind: output, shape index: {}]  }
   0x1   :  { %11 = vsyncpa [#allocation8 + $0x1], 0  ;;  %s1477_s14 = smov 0   ;;  %s1479_s15 = smov 0  }
   0x2   :  { %s1481_s16 = smov 0   ;;  %s1483_s17 = smov 0  }
   0x3 LB: > { %s1498_s18 = sadd.s32 4294967295, %s1448_s17   ;;  %s959_s19 = sadd.s32 4294967294, %s1448_s17   ;;  %s1448_s17 = sphi %s1483_s17, %s2205_s17   ;;  %s1444_s16 = sphi %s1481_s16, %s2204_s16   ;;  %s1440_s15 = sphi %s1479_s15, %s2203_s15   ;;  %s1436_s14 = sphi %s1477_s14, %s2202_s14  }
   0x4   : > { %s1502_s20 = sadd.s32 1, %s1448_s17   ;;  %s76_s21 = sadd.s32 1, %s1444_s16 }
   0x5   : > { %s73_s22 = ssub.s32 %s1448_s17, %s1502_s20  ;;  %p86_p0 = scmp.ne.s32.totalorder %s1444_s16, %s1440_s15 }
   0x6   : > { %p74_p1 = scmp.eq.s32.totalorder %s73_s22, 0  ;;  %p87_p2 = scmp.eq.s32.totalorder %s1498_s18, 1 }
   0x7   : > { %p92_p3 = scmp.ne.s32.totalorder %s1440_s15, %s1436_s14  ;;  %p93_p4 = scmp.eq.s32.totalorder %s959_s19, 1 }
   0x8   : > { %s1513_s23 = scalar_select %p74_p1, %s1444_s16, %s76_s21  }
   0x9   : > { %p1515_p5 = por %p87_p2, %p86_p0  ;;  %p1519_p6 = por %p93_p4, %p92_p3 }
   0xa   : > { %p962_p7 = scmp.ge.s32.totalorder %s1448_s17, 1  ;;  %p124_p8 = scmp.lt.s32.totalorder %s1448_s17, 3 }
   0xc   : > { %p125_p9 = pnand %p962_p7, %p124_p8 }
   0xd   : > { %p148_p10 = scmp.lt.s32.totalorder (!%p125_p9), %s1498_s18, 1  ;;  %s145_s9 = sand.u32 (!%p125_p9), 1, %s1440_s15  }
   0xe   : > { %128 = sbr.rel (%p125_p9) target bundleno = 343 (0x157), region = 28  ;;  %s963_s10 = sshll.u32 (!%p125_p9), %s145_s9, 3 }
   0xf   : > { %s1031_s11 = sshll.u32 (!%p125_p9), %s1498_s18, 7  ;;  %s147_s12 = scalar_lea.vmem (!%p125_p9), [#allocation7], %s963_s10 }
  0x10   : > { %s891_s13 = sshll.u32 (!%p125_p9), %s147_s12, 4  ;;  %s2152_s22 = scalar_lea.hbm (!%p125_p9), %s2190_s3, %s1031_s11  ;;  %s892_s13 = int_to_ptr.vmem [resolvable:$true] %s891_s13 }
  0x11   : > { %s1388_s27 = scalar_lea.vmem (!%p125_p9), %s892_s13, 128 }
  0x12   : > { %p1389_p11 = scmp.ne.s32.totalorder (!%p125_p9), %s892_s13, %s1388_s27 }
  0x13   : > { %v156_v1 = vlaneseq  ;;  %v1450_v2 = vmov 0.0   ;;  %s1529_s26 = scalar_select %p148_p10, %s1498_s18, 1  ;;  %vm2191_vm0 = vmmov 0   ;;  %v1452_v13 = vmov 1.0  }
  0x14   : > { %1136 = vmatprep.subr.mxu0 %v1450_v2  ;;  %1171 = vmatprep.subr.mxu1 %v1450_v2  ;;  %v2197_v0 = vstv %s2189_s2  ;;  %p1390_p12 = pnand %p1389_p11, %p1515_p5  ;;  %s1453_s18 = smov [#allocation7]  }
  0x15   : > { %v1532_v3 = vshrl.u32 %v156_v1, 7  ;;  %1168 = vmatprep.mubr.msk.f32.mxu0 %vm2191_vm0, %v1450_v2  ;;  %1203 = vmatprep.mubr.msk.f32.mxu1 %vm2191_vm0, %v1450_v2  ;;  %s154_s29 = scalar_lea.vmem %s2187_s0, %s1529_s26  ;;  %s964_s30 = sshll.u32 %s1529_s26, 3 }
  0x16   : > { %v1554_v8 = vld [vmem:[%s154_s29] ss:$0 sm:$0xff]  ;;  %s151_s6 = scalar_lea.vmem %s2188_s1, %s964_s30  ;;  %s878_s26 = scalar_lea.sflag [#allocation8], %s145_s9 }
  0x17   : > { %v1543_v4 = vadd.s32 120, %v1532_v3  ;;  %v1546_v5 = vadd.s32 112, %v1532_v3  ;;  %v1549_v6 = vadd.s32 104, %v1532_v3  ;;  %v1552_v7 = vadd.s32 96, %v1532_v3  ;;  %p1391_p13 = pneg %p1390_p12  ;;  %s1392_s28 = sshll.u32 %s1453_s18, 4  ;;  %s1393_s28 = int_to_ptr.vmem [resolvable:$false] %s1392_s28 }
  0x18   : > { %v1557_v9 = vadd.s32 88, %v1532_v3  ;;  %v1560_v10 = vadd.s32 80, %v1532_v3  ;;  %v1563_v11 = vadd.s32 72, %v1532_v3  ;;  %v1566_v12 = vadd.s32 64, %v1532_v3  ;;  %s1394_s29 = scalar_lea.vmem %s1393_s28, 256  ;;  %p1395_p0 = scmp.lt.s32.totalorder %s892_s13, %s1393_s28 }
  0x19   : > { %vm201_vm1 = vcmp.eq.s32.totalorder %v1543_v4, %v1554_v8  ;;  %vm200_vm2 = vcmp.eq.s32.totalorder %v1546_v5, %v1554_v8  ;;  %vm199_vm3 = vcmp.eq.s32.totalorder %v1549_v6, %v1554_v8  ;;  %vm198_vm4 = vcmp.eq.s32.totalorder %v1552_v7, %v1554_v8  ;;  %p1396_p1 = scmp.lt.s32.totalorder %s1394_s29, %s1388_s27 }
  0x1a   : > { %1137 = vmatpush3.msk.msra.mxu0 %vm201_vm1, %v1452_v13  ;;  %v980_v14 = vsel %vm200_vm2, 1.0, %v1450_v2  ;;  %v979_v15 = vsel %vm199_vm3, 1.0, %v1450_v2  ;;  %v978_v16 = vsel %vm198_vm4, 1.0, %v1450_v2  ;;  %vm197_vm5 = vcmp.eq.s32.totalorder %v1557_v9, %v1554_v8 }
  0x1b   : > { %1138 = vmatprep.subr.mxu0 %v1450_v2  ;;  %v1595_v17 = vsub.f32 %v980_v14, %v980_v14  ;;  %v1597_v18 = vsub.f32 %v979_v15, %v979_v15  ;;  %v1599_v19 = vsub.f32 %v978_v16, %v978_v16  ;;  %v977_v20 = vsel %vm197_vm5, 1.0, %v1450_v2  ;;  %p1397_p2 = por %p1396_p1, %p1395_p0 }
  0x1c   : > { %1139 = vmatpush3.msk.msra.mxu0 %vm200_vm2, %v1452_v13  ;;  %v1609_v21 = vsub.f32 %v977_v20, %v977_v20  ;;  %v981_v22 = vsel %vm201_vm1, 1.0, %v1450_v2  ;;  %vm196_vm6 = vcmp.eq.s32.totalorder %v1560_v10, %v1554_v8  ;;  %vm195_vm7 = vcmp.eq.s32.totalorder %v1563_v11, %v1554_v8 }
  0x1d   : > { %1140 = vmatprep.subr.mxu0 %v1450_v2  ;;  %v1620_v23 = vsub.f32 %v981_v22, %v981_v22  ;;  %v976_v24 = vsel %vm196_vm6, 1.0, %v1450_v2  ;;  %v336_v25 = vand.u32 4294901760, %v1595_v17  ;;  %v975_v27 = vsel %vm195_vm7, 1.0, %v1450_v2  ;;  %p1398_p3 = pnand %p1397_p2, %p1391_p13 }
  0x1e   : > { %1141 = vmatpush3.msk.msra.mxu0 %vm199_vm3, %v1452_v13  ;;  %v1631_v26 = vsub.f32 %v976_v24, %v976_v24  ;;  %v343_v28 = vand.u32 4294901760, %v1597_v18  ;;  %vm194_vm8 = vcmp.eq.s32.totalorder %v1566_v12, %v1554_v8  ;;  %v350_v32 = vand.u32 4294901760, %v1599_v19 }
  0x1f   : > { %1142 = vmatprep.subr.mxu0 %v1450_v2  ;;  %v329_v29 = vand.u32 4294901760, %v1620_v23  ;;  %v337_v30 = vsub.f32 %v1595_v17, %v336_v25  ;;  %v974_v31 = vsel %vm194_vm8, 1.0, %v1450_v2  ;;  %v1658_v34 = vadd.s32 56, %v1532_v3 }
  0x20   : > { %1143 = vmatpush3.msk.msra.mxu0 %vm198_vm4, %v1452_v13  ;;  %v344_v33 = vsub.f32 %v1597_v18, %v343_v28  ;;  %v357_v35 = vand.u32 4294901760, %v1609_v21  ;;  %v1665_v37 = vsub.f32 %v975_v27, %v975_v27  ;;  %v1668_v38 = vadd.s32 48, %v1532_v3 }
  0x21   : > { %1144 = vmatprep.subr.mxu0 %v1450_v2  ;;  %v330_v36 = vsub.f32 %v1620_v23, %v329_v29  ;;  %v1674_v39 = vsub.f32 %v974_v31, %v974_v31  ;;  %v351_v40 = vsub.f32 %v1599_v19, %v350_v32  ;;  %vm2194_vm9 = vcmp.eq.s32.totalorder %v1658_v34, %v1554_v8 }
  0x22   : > { %1145 = vmatpush3.msk.msra.mxu0 %vm197_vm5, %v1452_v13  ;;  %v364_v41 = vand.u32 4294901760, %v1631_v26  ;;  %v338_v43 = vand.u32 4294901760, %v337_v30  ;;  %v973_v44 = vsel %vm2194_vm9, 1.0, %v1450_v2  ;;  %vm2193_vm10 = vcmp.eq.s32.totalorder %v1668_v38, %v1554_v8 }
  0x23   : > { %1146 = vmatprep.subr.mxu0 %v1450_v2  ;;  %v331_v42 = vand.u32 4294901760, %v330_v36  ;;  %v345_v45 = vand.u32 4294901760, %v344_v33  ;;  %v358_v46 = vsub.f32 %v1609_v21, %v357_v35  ;;  %v972_v47 = vsel %vm2193_vm10, 1.0, %v1450_v2  ;;  %v155_v33 = vld [vmem:[%s151_s6] sm:$0xff] }
  0x24   : > { %1147 = vmatpush3.msk.msra.mxu0 %vm196_vm6, %v1452_v13  ;;  %v1701_v48 = vsub.f32 %v973_v44, %v973_v44  ;;  %v1704_v49 = vadd.s32 40, %v1532_v3  ;;  %v371_v50 = vand.u32 4294901760, %v1665_v37  ;;  %v1708_v51 = vadd.s32 32, %v1532_v3 }
  0x25   : > { %1172 = vmatpush3.msra.mxu1 %v331_v42  ;;  %1148 = vmatprep.subr.mxu0 %v1450_v2  ;;  %v352_v52 = vand.u32 4294901760, %v351_v40  ;;  %v365_v53 = vsub.f32 %v1631_v26, %v364_v41  ;;  %v378_v54 = vand.u32 4294901760, %v1674_v39  ;;  %v1720_v55 = vadd.s32 24, %v1532_v3 }
  0x26   : > { %1173 = vmatprep.subr.mxu1 %v1450_v2  ;;  %1149 = vmatpush3.msk.msra.mxu0 %vm195_vm7, %v1452_v13  ;;  %v1724_v56 = vsub.f32 %v972_v47, %v972_v47  ;;  %vm191_vm11 = vcmp.eq.s32.totalorder %v1704_v49, %v1554_v8  ;;  %vm190_vm12 = vcmp.eq.s32.totalorder %v1708_v51, %v1554_v8  ;;  %v1731_v57 = vadd.s32 16, %v1532_v3 }
  0x27   : > { %1174 = vmatpush3.msra.mxu1 %v338_v43  ;;  %1150 = vmatprep.subr.mxu0 %v1450_v2  ;;  %v971_v58 = vsel %vm191_vm11, 1.0, %v1450_v2  ;;  %v372_v59 = vsub.f32 %v1665_v37, %v371_v50  ;;  %v970_v60 = vsel %vm190_vm12, 1.0, %v1450_v2  ;;  %vm189_vm13 = vcmp.eq.s32.totalorder %v1720_v55, %v1554_v8 }
  0x28   : > { %1175 = vmatprep.subr.mxu1 %v1450_v2  ;;  %1151 = vmatpush3.msk.msra.mxu0 %vm194_vm8, %v1452_v13  ;;  %v359_v61 = vand.u32 4294901760, %v358_v46  ;;  %v1752_v62 = vsub.f32 %v971_v58, %v971_v58  ;;  %v969_v63 = vsel %vm189_vm13, 1.0, %v1450_v2  ;;  %v385_v14 = vand.u32 4294901760, %v1701_v48 }
  0x29   : > { %1176 = vmatpush3.msra.mxu1 %v345_v45  ;;  %1152 = vmatprep.subr.mxu0 %v1450_v2  ;;  %v379_v15 = vsub.f32 %v1674_v39, %v378_v54  ;;  %vm188_vm14 = vcmp.eq.s32.totalorder %v1731_v57, %v1554_v8  ;;  %v157_v16 = vand.u32 127, %v156_v1  ;;  %v366_v20 = vand.u32 4294901760, %v365_v53 }
  0x2a   : > { %1177 = vmatprep.subr.mxu1 %v1450_v2  ;;  %1153 = vmatpush3.msk.msra.mxu0 %vm2194_vm9, %v1452_v13  ;;  %v1774_v22 = vsub.f32 %v970_v60, %v970_v60  ;;  %v392_v24 = vand.u32 4294901760, %v1724_v56  ;;  %v1778_v27 = vadd.s32 8, %v1532_v3  ;;  %v373_v30 = vand.u32 4294901760, %v372_v59 }
  0x2b   : > { %1178 = vmatpush3.msra.mxu1 %v352_v52  ;;  %1154 = vmatprep.subr.mxu0 %v1450_v2  ;;  %v1785_v1 = vsub.f32 %v969_v63, %v969_v63  ;;  %v968_v31 = vsel %vm188_vm14, 1.0, %v1450_v2  ;;  %v386_v36 = vsub.f32 %v1701_v48, %v385_v14  ;;  %v399_v40 = vand.u32 4294901760, %v1752_v62 }
  0x2c   : > { %1179 = vmatprep.subr.mxu1 %v1450_v2  ;;  %1155 = vmatpush3.msk.msra.mxu0 %vm2193_vm10, %v1452_v13  ;;  %vm187_vm15 = vcmp.eq.s32.totalorder %v1778_v27, %v1554_v8  ;;  %vm186_vm0 = vcmp.eq.s32.totalorder %v1532_v3, %v1554_v8  ;;  %v380_v42 = vand.u32 4294901760, %v379_v15  ;;  %vm159_vm10 = vcmp.lt.s32.totalorder %v157_v16, 16 }
  0x2d   : > { %1180 = vmatpush3.msra.mxu1 %v359_v61  ;;  %1156 = vmatprep.subr.mxu0 %v1450_v2  ;;  %v967_v43 = vsel %vm187_vm15, 1.0, %v1450_v2  ;;  %v1810_v44 = vsub.f32 %v968_v31, %v968_v31  ;;  %v393_v45 = vsub.f32 %v1724_v56, %v392_v24  ;;  %v406_v46 = vand.u32 4294901760, %v1774_v22 }
  0x2e   : > { %1181 = vmatprep.subr.mxu1 %v1450_v2  ;;  %1157 = vmatpush3.msk.msra.mxu0 %vm191_vm11, %v1452_v13  ;;  %v160_v47 = vsel %vm159_vm10, %v155_v33, %v2197_v0  ;;  %v966_v52 = vsel %vm186_vm0, 1.0, %v1450_v2  ;;  %v387_v58 = vand.u32 4294901760, %v386_v36  ;;  %v1832_v59 = vsub.f32 %v967_v43, %v967_v43 }
  0x2f   : > { %1182 = vmatpush3.msra.mxu1 %v366_v20  ;;  %1158 = vmatprep.subr.mxu0 %v1450_v2  ;;  %v1829_v53 = vand.u32 4294901760, %v160_v47  ;;  %v400_v60 = vsub.f32 %v1752_v62, %v399_v40  ;;  %v413_v61 = vand.u32 4294901760, %v1785_v1  ;;  %v394_v15 = vand.u32 4294901760, %v393_v45 }
  0x30   : > { %1183 = vmatprep.subr.mxu1 %v1450_v2  ;;  %1159 = vmatpush3.msk.msra.mxu0 %vm190_vm12, %v1452_v13  ;;  %v1847_v16 = vsub.f32 %v966_v52, %v966_v52  ;;  %v407_v20 = vsub.f32 %v1774_v22, %v406_v46  ;;  %vm2198_vm10 = vcmp.eq.s32.totalorder %v1668_v38, %v1554_v8 }
  0x31   : > { %1184 = vmatpush3.msra.mxu1 %v373_v30  ;;  %1160 = vmatprep.subr.mxu0 %v1450_v2  ;;  %v1844_v63 = vsub.f32 %v160_v47, %v1829_v53  ;;  %v420_v30 = vand.u32 4294901760, %v1810_v44  ;;  %v401_v33 = vand.u32 4294901760, %v400_v60  ;;  %v414_v36 = vsub.f32 %v1785_v1, %v413_v61 }
  0x32   : > { %1185 = vmatprep.subr.mxu1 %v1450_v2  ;;  %1161 = vmatpush3.msk.msra.mxu0 %vm189_vm13, %v1452_v13  ;;  %v408_v45 = vand.u32 4294901760, %v407_v20  ;;  %v434_v52 = vand.u32 4294901760, %v1847_v16 }
  0x33   : > { %1186 = vmatpush3.msra.mxu1 %v380_v42  ;;  %1162 = vmatprep.subr.mxu0 %v1450_v2  ;;  %v318_v31 = vand.u32 4294901760, %v1844_v63  ;;  %v427_v42 = vand.u32 4294901760, %v1832_v59  ;;  %v421_v47 = vsub.f32 %v1810_v44, %v420_v30  ;;  %v415_v60 = vand.u32 4294901760, %v414_v36 }
  0x34   : > { %1187 = vmatprep.subr.mxu1 %v1450_v2  ;;  %1163 = vmatpush3.msk.msra.mxu0 %vm188_vm14, %v1452_v13  ;;  %v435_v0 = vsub.f32 %v1847_v16, %v434_v52 }
  0x35   : > { %1188 = vmatpush3.msra.mxu1 %v387_v58  ;;  %1164 = vmatprep.subr.mxu0 %v1450_v2  ;;  %v319_v43 = vsub.f32 %v1844_v63, %v318_v31  ;;  %v422_v20 = vand.u32 4294901760, %v421_v47 }
  0x36   : > { %1189 = vmatprep.subr.mxu1 %v1450_v2  ;;  %1165 = vmatpush3.msk.msra.mxu0 %vm187_vm15, %v1452_v13  ;;  %v436_v36 = vand.u32 4294901760, %v435_v0 }
  0x37   : > { %1190 = vmatpush3.msra.mxu1 %v394_v15  ;;  %1166 = vmatprep.subr.mxu0 %v1450_v2  ;;  %v320_v58 = vand.u32 4294901760, %v319_v43  ;;  %v428_v15 = vsub.f32 %v1832_v59, %v427_v42 }
  0x38   : > { %1191 = vmatprep.subr.mxu1 %v1450_v2  ;;  %1167 = vmatpush3.msk.msra.mxu0 %vm186_vm0, %v1452_v13 }
  0x39   : > { %1192 = vmatpush3.msra.mxu1 %v401_v33  ;;  %1206 = vmatprep.subr.mxu0 %v1450_v2  ;;  %v429_v33 = vand.u32 4294901760, %v428_v15 }
  0x3a   : > { %1193 = vmatprep.subr.mxu1 %v1450_v2  ;;  %1169 = vmatmul.mubr.f32.vlgmr.msra.gmra.mxu0 %v320_v58 }
  0x3b   : > { %1194 = vmatpush3.msra.mxu1 %v408_v45  ;;  %1207 = vmatpush3.msra.mxu0 %v1620_v23 }
  0x3c   : > { %1195 = vmatprep.subr.mxu1 %v1450_v2  ;;  %1208 = vmatprep.subr.mxu0 %v1450_v2 }
  0x3d   : > { %1196 = vmatpush3.msra.mxu1 %v415_v60  ;;  %1209 = vmatpush3.msra.mxu0 %v1595_v17 }
  0x3e   : > { %1197 = vmatprep.subr.mxu1 %v1450_v2  ;;  %1210 = vmatprep.subr.mxu0 %v1450_v2 }
  0x3f   : > { %1198 = vmatpush3.msra.mxu1 %v422_v20  ;;  %1211 = vmatpush3.msra.mxu0 %v1597_v18 }
  0x40   : > { %1199 = vmatprep.subr.mxu1 %v1450_v2  ;;  %1212 = vmatprep.subr.mxu0 %v1450_v2 }
  0x41   : > { %1200 = vmatpush3.msra.mxu1 %v429_v33  ;;  %1213 = vmatpush3.msra.mxu0 %v1599_v19 }
  0x42   : > { %1201 = vmatprep.subr.mxu1 %v1450_v2  ;;  %1214 = vmatprep.subr.mxu0 %v1450_v2 }
  0x43   : > { %1202 = vmatpush3.msra.mxu1 %v436_v36  ;;  %1215 = vmatpush3.msra.mxu0 %v1609_v21 }
  0x44   : > { %1204 = vmatmul.mubr.f32.vlgmr.msra.gmra.mxu1 %v1829_v53  ;;  %1241 = vmatprep.subr.mxu1 %v1450_v2 }
  0x45   : > { %1216 = vmatprep.subr.mxu0 %v1450_v2  ;;  %1242 = vmatpush3.msk.msra.mxu1 %vm201_vm1, %v1452_v13 }
  0x46   : > { %1217 = vmatpush3.msra.mxu0 %v1631_v26  ;;  %1243 = vmatprep.subr.mxu1 %v1450_v2 }
  0x47   : > { %1218 = vmatprep.subr.mxu0 %v1450_v2  ;;  %1244 = vmatpush3.msk.msra.mxu1 %vm200_vm2, %v1452_v13 }
  0x48   : > { %1219 = vmatpush3.msra.mxu0 %v1665_v37  ;;  %1245 = vmatprep.subr.mxu1 %v1450_v2 }
  0x49   : > { %1220 = vmatprep.subr.mxu0 %v1450_v2  ;;  %1246 = vmatpush3.msk.msra.mxu1 %vm199_vm3, %v1452_v13 }
  0x4a   : > { %1221 = vmatpush3.msra.mxu0 %v1674_v39  ;;  %1247 = vmatprep.subr.mxu1 %v1450_v2 }
  0x4b   : > { %1222 = vmatprep.subr.mxu0 %v1450_v2  ;;  %1248 = vmatpush3.msk.msra.mxu1 %vm198_vm4, %v1452_v13 }
  0x4c   : > { %1223 = vmatpush3.msra.mxu0 %v1701_v48  ;;  %1249 = vmatprep.subr.mxu1 %v1450_v2 }
  0x4d   : > { %1224 = vmatprep.subr.mxu0 %v1450_v2  ;;  %1250 = vmatpush3.msk.msra.mxu1 %vm197_vm5, %v1452_v13 }
  0x4e   : > { %1225 = vmatpush3.msra.mxu0 %v1724_v56  ;;  %1251 = vmatprep.subr.mxu1 %v1450_v2 }
  0x4f   : > { %1226 = vmatprep.subr.mxu0 %v1450_v2  ;;  %1252 = vmatpush3.msk.msra.mxu1 %vm196_vm6, %v1452_v13 }
  0x50   : > { %1227 = vmatpush3.msra.mxu0 %v1752_v62  ;;  %1253 = vmatprep.subr.mxu1 %v1450_v2 }
  0x51   : > { %1228 = vmatprep.subr.mxu0 %v1450_v2  ;;  %1254 = vmatpush3.msk.msra.mxu1 %vm195_vm7, %v1452_v13 }
  0x52   : > { %1229 = vmatpush3.msra.mxu0 %v1774_v22  ;;  %1255 = vmatprep.subr.mxu1 %v1450_v2 }
  0x53   : > { %1230 = vmatprep.subr.mxu0 %v1450_v2  ;;  %1256 = vmatpush3.msk.msra.mxu1 %vm194_vm8, %v1452_v13 }
  0x54   : > { %1231 = vmatpush3.msra.mxu0 %v1785_v1  ;;  %1257 = vmatprep.subr.mxu1 %v1450_v2 }
  0x55   : > { %1232 = vmatprep.subr.mxu0 %v1450_v2  ;;  %1258 = vmatpush3.msk.msra.mxu1 %vm2194_vm9, %v1452_v13  ;;  %vm2199_vm9 = vmmov 0  }
  0x56   : > { %1233 = vmatpush3.msra.mxu0 %v1810_v44  ;;  %1259 = vmatprep.subr.mxu1 %v1450_v2 }
  0x57   : > { %1234 = vmatprep.subr.mxu0 %v1450_v2  ;;  %1260 = vmatpush3.msk.msra.mxu1 %vm2198_vm10, %v1452_v13 }
  0x58   : > { %1235 = vmatpush3.msra.mxu0 %v1832_v59  ;;  %1261 = vmatprep.subr.mxu1 %v1450_v2 }
  0x59   : > { %1236 = vmatprep.subr.mxu0 %v1450_v2  ;;  %1262 = vmatpush3.msk.msra.mxu1 %vm191_vm11, %v1452_v13 }
  0x5a   : > { %1237 = vmatpush3.msra.mxu0 %v1847_v16  ;;  %1238 = vmatprep.mubr.msk.f32.mxu0 %vm2199_vm9, %v1450_v2 }
  0x5b   : > { %1263 = vmatprep.subr.mxu1 %v1450_v2  ;;  %1239 = vmatmul.mubr.f32.vlgmr.msra.gmra.mxu0 %v1844_v63 }
  0x5c   : > { %1264 = vmatpush3.msk.msra.mxu1 %vm190_vm12, %v1452_v13  ;;  %1276 = vmatprep.subr.mxu0 %v1450_v2 }
  0x5d   : > { %1265 = vmatprep.subr.mxu1 %v1450_v2  ;;  %1277 = vmatpush3.msra.mxu0 %v329_v29 }
  0x5e   : > { %1266 = vmatpush3.msk.msra.mxu1 %vm189_vm13, %v1452_v13  ;;  %1278 = vmatprep.subr.mxu0 %v1450_v2 }
  0x5f   : > { %1267 = vmatprep.subr.mxu1 %v1450_v2  ;;  %1279 = vmatpush3.msra.mxu0 %v336_v25 }
  0x60   : > { %1268 = vmatpush3.msk.msra.mxu1 %vm188_vm14, %v1452_v13  ;;  %1280 = vmatprep.subr.mxu0 %v1450_v2 }
  0x61   : > { %1269 = vmatprep.subr.mxu1 %v1450_v2  ;;  %1281 = vmatpush3.msra.mxu0 %v343_v28 }
  0x62   : > { %1270 = vmatpush3.msk.msra.mxu1 %vm187_vm15, %v1452_v13  ;;  %1282 = vmatprep.subr.mxu0 %v1450_v2 }
  0x63   : > { %1271 = vmatprep.subr.mxu1 %v1450_v2  ;;  %1283 = vmatpush3.msra.mxu0 %v350_v32 }
  0x64   : > { %1272 = vmatpush3.msk.msra.mxu1 %vm186_vm0, %v1452_v13  ;;  %1273 = vmatprep.mubr.msk.f32.mxu1 %vm2199_vm9, %v1450_v2 }
  0x65   : > { %1284 = vmatprep.subr.mxu0 %v1450_v2  ;;  %1274 = vmatmul.mubr.f32.vlgmr.msra.gmra.mxu1 %v318_v31 }
  0x66   : > { %1285 = vmatpush3.msra.mxu0 %v357_v35  ;;  %1311 = vmatprep.subr.mxu1 %v1450_v2 }
  0x67   : > { %1286 = vmatprep.subr.mxu0 %v1450_v2  ;;  %1312 = vmatpush3.msk.msra.mxu1 %vm201_vm1, %v1452_v13  ;;  %vm2200_vm1 = vcmp.eq.s32.totalorder %v1658_v34, %v1554_v8 }
  0x68   : > { %1287 = vmatpush3.msra.mxu0 %v364_v41  ;;  %1313 = vmatprep.subr.mxu1 %v1450_v2 }
  0x69   : > { %1288 = vmatprep.subr.mxu0 %v1450_v2  ;;  %1314 = vmatpush3.msk.msra.mxu1 %vm200_vm2, %v1452_v13  ;;  %vm2201_vm2 = vmmov %vm2198_vm10 }
  0x6a   : > { %1289 = vmatpush3.msra.mxu0 %v371_v50  ;;  %1315 = vmatprep.subr.mxu1 %v1450_v2 }
  0x6b   : > { %1290 = vmatprep.subr.mxu0 %v1450_v2  ;;  %1316 = vmatpush3.msk.msra.mxu1 %vm199_vm3, %v1452_v13 }
  0x6c   : > { %1291 = vmatpush3.msra.mxu0 %v378_v54  ;;  %1317 = vmatprep.subr.mxu1 %v1450_v2 }
  0x6d   : > { %1292 = vmatprep.subr.mxu0 %v1450_v2  ;;  %1318 = vmatpush3.msk.msra.mxu1 %vm198_vm4, %v1452_v13 }
  0x6e   : > { %1293 = vmatpush3.msra.mxu0 %v385_v14  ;;  %1319 = vmatprep.subr.mxu1 %v1450_v2 }
  0x6f   : > { %1294 = vmatprep.subr.mxu0 %v1450_v2  ;;  %1320 = vmatpush3.msk.msra.mxu1 %vm197_vm5, %v1452_v13 }
  0x70   : > { %1295 = vmatpush3.msra.mxu0 %v392_v24  ;;  %1321 = vmatprep.subr.mxu1 %v1450_v2 }
  0x71   : > { %1296 = vmatprep.subr.mxu0 %v1450_v2  ;;  %1322 = vmatpush3.msk.msra.mxu1 %vm196_vm6, %v1452_v13 }
  0x72   : > { %1297 = vmatpush3.msra.mxu0 %v399_v40  ;;  %1323 = vmatprep.subr.mxu1 %v1450_v2 }
  0x73   : > { %1298 = vmatprep.subr.mxu0 %v1450_v2  ;;  %1324 = vmatpush3.msk.msra.mxu1 %vm195_vm7, %v1452_v13 }
  0x74   : > { %1299 = vmatpush3.msra.mxu0 %v406_v46  ;;  %1325 = vmatprep.subr.mxu1 %v1450_v2 }
  0x75   : > { %1300 = vmatprep.subr.mxu0 %v1450_v2  ;;  %1326 = vmatpush3.msk.msra.mxu1 %vm194_vm8, %v1452_v13 }
  0x76   : > { %1301 = vmatpush3.msra.mxu0 %v413_v61  ;;  %1327 = vmatprep.subr.mxu1 %v1450_v2 }
  0x77   : > { %1302 = vmatprep.subr.mxu0 %v1450_v2  ;;  %1328 = vmatpush3.msk.msra.mxu1 %vm2200_vm1, %v1452_v13 }
  0x78   : > { %1303 = vmatpush3.msra.mxu0 %v420_v30  ;;  %1329 = vmatprep.subr.mxu1 %v1450_v2 }
  0x79   : > { %1304 = vmatprep.subr.mxu0 %v1450_v2  ;;  %1330 = vmatpush3.msk.msra.mxu1 %vm2201_vm2, %v1452_v13 }
  0x7a   : > { %1305 = vmatpush3.msra.mxu0 %v427_v42  ;;  %1331 = vmatprep.subr.mxu1 %v1450_v2 }
  0x7b   : > { %1306 = vmatprep.subr.mxu0 %v1450_v2  ;;  %1332 = vmatpush3.msk.msra.mxu1 %vm191_vm11, %v1452_v13 }
  0x7c   : > { %1307 = vmatpush3.msra.mxu0 %v434_v52  ;;  %1308 = vmatprep.mubr.msk.f32.mxu0 %vm2199_vm9, %v1450_v2 }
  0x7d   : > { %1333 = vmatprep.subr.mxu1 %v1450_v2  ;;  %1309 = vmatmul.mubr.f32.vlgmr.msra.gmra.mxu0 %v1829_v53 }
  0x7e   : > { %1334 = vmatpush3.msk.msra.mxu1 %vm190_vm12, %v1452_v13  ;;  %1343 = vmatprep.mubr.msk.f32.mxu1 %vm2199_vm9, %v1450_v2 }
  0x7f   : > { %1335 = vmatprep.subr.mxu1 %v1450_v2 }
  0x80   : > { %1336 = vmatpush3.msk.msra.mxu1 %vm189_vm13, %v1452_v13 }
  0x81   : > { %1337 = vmatprep.subr.mxu1 %v1450_v2 }
  0x82   : > { %1338 = vmatpush3.msk.msra.mxu1 %vm188_vm14, %v1452_v13 }
  0x83   : > { %1339 = vmatprep.subr.mxu1 %v1450_v2 }
  0x84   : > { %1340 = vmatpush3.msk.msra.mxu1 %vm187_vm15, %v1452_v13 }
  0x85   : > { %1341 = vmatprep.subr.mxu1 %v1450_v2 }
  0x86   : > { %1342 = vmatpush3.msk.msra.mxu1 %vm186_vm0, %v1452_v13 }
  0x87   : > { %1344 = vmatmul.mubr.f32.vlgmr.msra.gmra.mxu1 %v1829_v53 }
  0xfa   : > { %v322_v0 = vpop.f32.mrf.mxu0 }
  0xfc   : > { %v1170_v4 = vpop.f32.mrf.mxu0 }
 0x104   : > { %v473_v5 = vpop.f32.mrf.mxu1 }
 0x105   : > { %v474_v2 = vadd.f32 %v473_v5, %v322_v0 }
 0x106   : > { %v1205_v6 = vpop.f32.mrf.mxu1 }
 0x11b   : > { %v577_v7 = vpop.f32.mrf.mxu0 }
 0x11c   : > { %v578_v18 = vadd.f32 %v577_v7, %v474_v2 }
 0x11d   : > { %v1240_v9 = vpop.f32.mrf.mxu0 }
 0x125   : > { %v666_v10 = vpop.f32.mrf.mxu1 }
 0x126   : > { %v667_v3 = vadd.f32 %v666_v10, %v578_v18 }
 0x127   : > { %v1275_v11 = vpop.f32.mrf.mxu1 }
 0x13d   : > { %v785_v12 = vpop.f32.mrf.mxu0 }
 0x13e   : > { %v786_v8 = vadd.f32 %v785_v12, %v667_v3 }
 0x13f   : > { %v1310_v17 = vpop.f32.mrf.mxu0 }
 0x147   : > { %v872_v13 = vpop.f32.mrf.mxu1 }
 0x148   : > { %v873_v19 = vadd.f32 %v872_v13, %v786_v8 }
 0x149   : > { %v1345_v21 = vpop.f32.mrf.mxu1 }
 0x14a   : > { %876 = vst [vmem:[%s147_s12] sm:$0xff] %v873_v19 }
 0x14b   : > { %1401 = shalt.err (!%p1398_p3)
}
 0x14c   : > { %s1402_s30 = scalar_lea.hbm %s2152_s22, 128  ;;  %s1406_s6 = scalar_lea.hbm %s2190_s3, 256 }
 0x14d   : > { %p1403_p4 = scmp.ne.s32.totalorder %s2152_s22, %s1402_s30  ;;  %p1407_p9 = scmp.lt.s32.totalorder %s2152_s22, %s2190_s3 }
 0x14e   : > { %p1408_p10 = scmp.lt.s32.totalorder %s1406_s6, %s1402_s30 }
 0x14f   : > { %p1404_p7 = pnand %p1403_p4, %p1515_p5 }
 0x150   : > { %p1409_p11 = por %p1408_p10, %p1407_p9 }
 0x151   : > { %p1405_p8 = pneg %p1404_p7 }
 0x153   : > { %p1410_p12 = pnand %p1409_p11, %p1405_p8 }
 0x155   : > { %1413 = shalt.err (!%p1410_p12)
}
 0x156   : > { %1346 = dma.vmem_to_hbm [thread:$0]  (%p1515_p5), %s892_s13, 128, %s2152_s22, %s878_s26  }
 0x157 PF: > { %p1352_p13 = scmp.ge.s32.totalorder %s1448_s17, 2  ;;  %s903_s9 = sand.u32 1, %s1436_s14  }
 0x158   : > { %s904_s10 = scalar_lea.sflag [#allocation8], %s903_s9 }
 0x159   : > { %p1349_p0 = pnand %p1352_p13, %p1519_p6 }
 0x15b   : > { %p1350_p1 = pneg %p1349_p0 }
 0x15d   : > { %1431 = dma.done.wait (%p1350_p1), %s904_s10, 128  }
 0x15e   : > { %1433 = vsyncadd (%p1350_p1), %s904_s10, 4294967168  ;;  %p14_p2 = scmp.ge.s32.totalorder %s1502_s20, 4   ;;  %s2202_s14 = smov %s1440_s15 }
 0x15f   : > { %s2203_s15 = smov %s1444_s16  ;;  %s2204_s16 = smov %s1513_s23 }
 0x160   : > { %s2205_s17 = smov %s1502_s20  ;;  %16 = sbr.rel (!%p14_p2) target bundleno = 3 (0x3), region = 66 }
 0x165   :  { %909 = vsyncpa [#allocation8], 1 }
 0x166   :  { %911 = vsyncpa [#allocation8 + $0x1], 1 }

</bundles_post_ra>
